<compile_context>
chip_gen: v5e
topology: v5e:2x2
jax: 0.10.0
libtpu: 0.0.40
codegen_flags: <defaults>
</compile_context>

<pallas_src>
import functools

import jax
import jax.numpy as jnp
from jax import lax
from jax.experimental import pallas as pl
from jax.experimental.pallas import tpu as pltpu

LANE = 128           # vreg lane width
SUBLANE = 8          # f32 sublane count
MAX_ROW_TILE = 1024  # (1024, 128) f32 = 512 KiB per input block; 2 MiB total w/ double buffering


def _round_up(x: int, m: int) -> int:
    return ((x + m - 1) // m) * m


def _masked_mse_kernel(pred_ref, ref_ref, sse_out, cnt_out, sse_acc, cnt_acc, *,
                       rows, row_tile, tiles_per_split, needs_row_mask):
    s = pl.program_id(0)   # split index ("parallel"; maps to separate TCs on v7x)
    i = pl.program_id(1)   # row-tile within the split (sequential reduction)

    @pl.when(i == 0)
    def _():
        sse_acc[...] = jnp.zeros_like(sse_acc)
        cnt_acc[...] = jnp.zeros_like(cnt_acc)

    # Stream at native dtype; the f32 upcast happens on the VPU, hidden under DMA.
    p = pred_ref[...].astype(jnp.float32)
    r = ref_ref[...].astype(jnp.float32)

    valid = jnp.logical_not(jnp.isnan(r))
    if needs_row_mask:
        # Rows past the true row count belong to Pallas block padding (partial
        # trailing block) or to a clamped duplicate tile of an uneven split;
        # their contents are undefined, so mask them out at row granularity.
        row_iota = lax.broadcasted_iota(jnp.int32, (row_tile, LANE), 0)
        tile_row0 = (s * tiles_per_split + i) * row_tile
        valid = jnp.logical_and(valid, (tile_row0 + row_iota) < rows)

    diff = jnp.where(valid, p - r, 0.0)
    sq = diff * diff
    # Fold the (row_tile, LANE) tile into an (8, 128) vreg accumulator using a
    # leading-axis (layout-preserving) reshape + sum: pure elementwise VPU adds,
    # no per-step cross-lane work.
    sse_acc[...] += sq.reshape(row_tile // SUBLANE, SUBLANE, LANE).sum(axis=0)
    cnt_acc[...] += valid.astype(jnp.float32).reshape(
        row_tile // SUBLANE, SUBLANE, LANE).sum(axis=0)

    @pl.when(i == tiles_per_split - 1)
    def _():
        sse_out[...] = sse_acc[...][None]
        cnt_out[...] = cnt_acc[...][None]


def masked_mse_loss(pred, ref, *, weight=1.0):
    """weight * MSE over elements where ref is not NaN (torch MSELoss 'mean')."""
    assert pred.shape == ref.shape
    n = int(pred.size)
    if n == 0:
        # torch MSELoss over an empty (fully masked) selection yields NaN.
        return jnp.float32(jnp.nan)

    p = pred.reshape(-1)
    r = ref.reshape(-1)

    # Common case (n multiple of 8*128): pure metadata reshape, no HBM copy,
    # no upcast. Fallback for awkward sizes: pad ref with NaN (self-masking)
    # and pred with 0 up to a multiple of 1024 elements.
    # TODO(synk): a fully copy-free tail path would tile the natural >=2D
    # shape directly instead of padding the flattened view.
    n_pad = _round_up(n, SUBLANE * LANE)
    if n_pad != n:
        p = jnp.pad(p, (0, n_pad - n), constant_values=0)
        r = jnp.pad(r, (0, n_pad - n), constant_values=jnp.nan)

    rows = n_pad // LANE                      # multiple of 8
    p2 = p.reshape(rows, LANE)
    r2 = r.reshape(rows, LANE)

    row_tile = min(MAX_ROW_TILE, rows)        # multiple of 8 (or full extent)
    total_tiles = pl.cdiv(rows, row_tile)
    # Two independent partial reductions so v7x's two TensorCores can both
    # stream HBM; on single-TC chips (v5e/v6e) the outer axis runs sequentially.
    num_splits = 2 if total_tiles >= 2 else 1
    tiles_per_split = pl.cdiv(total_tiles, num_splits)
    needs_row_mask = (num_splits * tiles_per_split * row_tile) != rows
    last_block = total_tiles - 1

    if num_splits * tiles_per_split == total_tiles:
        def in_index_map(s, i):
            return (s * tiles_per_split + i, 0)
    else:
        def in_index_map(s, i):
            # Uneven split: clamp so no block DMA ever goes out of bounds; the
            # duplicated tile contributes nothing thanks to the in-kernel mask.
            return (jnp.minimum(s * tiles_per_split + i, last_block), 0)

    kernel = functools.partial(
        _masked_mse_kernel,
        rows=rows,
        row_tile=row_tile,
        tiles_per_split=tiles_per_split,
        needs_row_mask=needs_row_mask,
    )

    sse_parts, cnt_parts = pl.pallas_call(
        kernel,
        out_shape=(
            jax.ShapeDtypeStruct((num_splits, SUBLANE, LANE), jnp.float32),
            jax.ShapeDtypeStruct((num_splits, SUBLANE, LANE), jnp.float32),
        ),
        grid_spec=pltpu.PrefetchScalarGridSpec(
            num_scalar_prefetch=0,
            grid=(num_splits, tiles_per_split),
            in_specs=[
                pl.BlockSpec((row_tile, LANE), in_index_map),
                pl.BlockSpec((row_tile, LANE), in_index_map),
            ],
            out_specs=(
                pl.BlockSpec((1, SUBLANE, LANE), lambda s, i: (s, 0, 0)),
                pl.BlockSpec((1, SUBLANE, LANE), lambda s, i: (s, 0, 0)),
            ),
            scratch_shapes=[
                pltpu.VMEM((SUBLANE, LANE), jnp.float32),
                pltpu.VMEM((SUBLANE, LANE), jnp.float32),
            ],
        ),
        compiler_params=pltpu.CompilerParams(
            dimension_semantics=("parallel", "arbitrary"),
        ),
    )(p2, r2)

    # Tiny final reduction + divide in plain JAX (runs once, negligible).
    sse = jnp.sum(sse_parts)
    cnt = jnp.sum(cnt_parts)
    # cnt == 0 (all-NaN ref) yields NaN, matching torch behavior on an empty selection.
    return (jnp.float32(weight) * sse / cnt).astype(jnp.float32)


class MaskedMSELoss:
    """JAX/Pallas port of the PyTorch MaskedMSELoss module."""

    def __init__(self, loss_config: dict, column_name: str) -> None:
        self.weight = loss_config.get("weight", 1.0)
        self.column_name = column_name

    def __call__(self, pred: dict, ref: dict):
        return masked_mse_loss(
            pred[self.column_name], ref[self.column_name], weight=self.weight
        )


def _reference_loss(pred_x, ref_x, weight):
    valid = ~jnp.isnan(ref_x)
    diff = jnp.where(valid, pred_x - ref_x, 0.0)
    return weight * jnp.sum(diff * diff) / jnp.sum(valid)


if __name__ == "__main__":
    key = jax.random.PRNGKey(0)

    # --- primary small test: (2, 4, 16, 16), n = 2048 (copy-free fast path) ---
    k1, k2, k3, key = jax.random.split(key, 4)
    shape = (2, 4, 16, 16)
    pred_x = jax.random.normal(k1, shape, dtype=jnp.float32)
    ref_x = jax.random.normal(k2, shape, dtype=jnp.float32)
    ref_x = jnp.where(jax.random.uniform(k3, shape) < 0.25, jnp.nan, ref_x)

    module = MaskedMSELoss({"weight": 2.0}, "energy")
    loss = module({"energy": pred_x}, {"energy": ref_x})
    loss = jax.block_until_ready(loss)
    ref_loss = _reference_loss(pred_x, ref_x, 2.0)
    assert jnp.allclose(loss, ref_loss, rtol=1e-5, atol=1e-6), (loss, ref_loss)

    # --- awkward size: (3, 5, 7, 11) = 1155 elements (NaN-pad fallback path) ---
    k1, k2, k3, key = jax.random.split(key, 4)
    shape = (3, 5, 7, 11)
    pred_x = jax.random.normal(k1, shape, dtype=jnp.float32)
    ref_x = jax.random.normal(k2, shape, dtype=jnp.float32)
    ref_x = jnp.where(jax.random.uniform(k3, shape) < 0.25, jnp.nan, ref_x)
    loss = jax.block_until_ready(masked_mse_loss(pred_x, ref_x, weight=0.5))
    ref_loss = _reference_loss(pred_x, ref_x, 0.5)
    assert jnp.allclose(loss, ref_loss, rtol=1e-4, atol=1e-6), (loss, ref_loss)

    # --- multi-tile + split + partial-block path: (4, 300, 128) = 153600 elems ---
    k1, k2, k3, key = jax.random.split(key, 4)
    shape = (4, 300, 128)
    pred_x = jax.random.normal(k1, shape, dtype=jnp.float32)
    ref_x = jax.random.normal(k2, shape, dtype=jnp.float32)
    ref_x = jnp.where(jax.random.uniform(k3, shape) < 0.25, jnp.nan, ref_x)
    loss = jax.block_until_ready(masked_mse_loss(pred_x, ref_x, weight=1.0))
    ref_loss = _reference_loss(pred_x, ref_x, 1.0)
    assert jnp.allclose(loss, ref_loss, rtol=1e-4, atol=1e-6), (loss, ref_loss)

    print("KERNEL_OK")
</pallas_src>

<mosaic_0001>
module attributes {stable_mosaic.version = 11 : i64} {
  func.func @_masked_mse_kernel(%arg0: i32, %arg1: i32, %arg2: memref<16x128xf32, #tpu.memory_space<vmem>>, %arg3: memref<16x128xf32, #tpu.memory_space<vmem>>, %arg4: memref<1x8x128xf32, #tpu.memory_space<vmem>>, %arg5: memref<1x8x128xf32, #tpu.memory_space<vmem>>, %arg6: memref<8x128xf32, #tpu.memory_space<vmem>>, %arg7: memref<8x128xf32, #tpu.memory_space<vmem>>) attributes {dimension_semantics = [#tpu.dimension_semantics<parallel>, #tpu.dimension_semantics<arbitrary>], iteration_bounds = array<i64: 1, 1>, scalar_prefetch = 0 : i64, scratch_operands = 2 : i64, tpu.core_type = #tpu.core_type<tc>, window_params = [{transform_indices = @transform_0, window_bounds = array<i64: 16, 128>}, {transform_indices = @transform_1, window_bounds = array<i64: 16, 128>}, {transform_indices = @transform_2, window_bounds = array<i64: 1, 8, 128>}, {transform_indices = @transform_3, window_bounds = array<i64: 1, 8, 128>}]} {
    %c0_i32 = arith.constant 0 : i32
    %0 = arith.cmpi eq, %arg1, %c0_i32 : i32
    %1 = arith.extui %0 : i1 to i32
    %c0_i32_0 = arith.constant 0 : i32
    %2 = arith.cmpi ne, %1, %c0_i32_0 : i32
    scf.if %2 {
      %cst_17 = arith.constant 0.000000e+00 : f32
      %26 = vector.broadcast %cst_17 : f32 to vector<8x128xf32>
      %c0_18 = arith.constant 0 : index
      %c0_19 = arith.constant 0 : index
      %27 = vector.load %arg6[%c0_18, %c0_19] : memref<8x128xf32, #tpu.memory_space<vmem>>, vector<8x128xf32>
      tpu.vector_store %arg6[%c0_18, %c0_19], %26 {strides = array<i32>} : memref<8x128xf32, #tpu.memory_space<vmem>>, vector<8x128xf32>,
      %cst_20 = arith.constant 0.000000e+00 : f32
      %28 = vector.broadcast %cst_20 : f32 to vector<8x128xf32>
      %c0_21 = arith.constant 0 : index
      %c0_22 = arith.constant 0 : index
      %29 = vector.load %arg7[%c0_21, %c0_22] : memref<8x128xf32, #tpu.memory_space<vmem>>, vector<8x128xf32>
      tpu.vector_store %arg7[%c0_21, %c0_22], %28 {strides = array<i32>} : memref<8x128xf32, #tpu.memory_space<vmem>>, vector<8x128xf32>,
    } else {
    }
    %c0 = arith.constant 0 : index
    %c0_1 = arith.constant 0 : index
    %3 = vector.load %arg2[%c0, %c0_1] : memref<16x128xf32, #tpu.memory_space<vmem>>, vector<16x128xf32>
    %c0_2 = arith.constant 0 : index
    %c0_3 = arith.constant 0 : index
    %4 = vector.load %arg3[%c0_2, %c0_3] : memref<16x128xf32, #tpu.memory_space<vmem>>, vector<16x128xf32>
    %5 = arith.cmpf one, %4, %4 : vector<16x128xf32>
    %cst = arith.constant dense<true> : vector<16x128xi1>
    %6 = arith.xori %5, %cst : vector<16x128xi1>
    %7 = arith.subf %3, %4 : vector<16x128xf32>
    %cst_4 = arith.constant 0.000000e+00 : f32
    %8 = vector.broadcast %cst_4 : f32 to vector<16x128xf32>
    %9 = arith.select %6, %7, %8 : vector<16x128xi1>, vector<16x128xf32>
    %10 = arith.mulf %9, %9 : vector<16x128xf32>
    %c0_5 = arith.constant 0 : index
    %c0_6 = arith.constant 0 : index
    %11 = vector.load %arg6[%c0_5, %c0_6] : memref<8x128xf32, #tpu.memory_space<vmem>>, vector<8x128xf32>
    %12 = vector.shape_cast %10 : vector<16x128xf32> to vector<2x8x128xf32>
    %cst_7 = arith.constant dense<0.000000e+00> : vector<8x128xf32>
    %13 = vector.multi_reduction <add>, %12, %cst_7 [0] : vector<2x8x128xf32> to vector<8x128xf32>
    %14 = arith.addf %11, %13 : vector<8x128xf32>
    %c0_8 = arith.constant 0 : index
    %c0_9 = arith.constant 0 : index
    %15 = vector.load %arg6[%c0_8, %c0_9] : memref<8x128xf32, #tpu.memory_space<vmem>>, vector<8x128xf32>
    tpu.vector_store %arg6[%c0_8, %c0_9], %14 {strides = array<i32>} : memref<8x128xf32, #tpu.memory_space<vmem>>, vector<8x128xf32>,
    %c0_10 = arith.constant 0 : index
    %c0_11 = arith.constant 0 : index
    %16 = vector.load %arg7[%c0_10, %c0_11] : memref<8x128xf32, #tpu.memory_space<vmem>>, vector<8x128xf32>
    %17 = arith.extui %6 : vector<16x128xi1> to vector<16x128xi32>
    %18 = arith.sitofp %17 : vector<16x128xi32> to vector<16x128xf32>
    %19 = vector.shape_cast %18 : vector<16x128xf32> to vector<2x8x128xf32>
    %cst_12 = arith.constant dense<0.000000e+00> : vector<8x128xf32>
    %20 = vector.multi_reduction <add>, %19, %cst_12 [0] : vector<2x8x128xf32> to vector<8x128xf32>
    %21 = arith.addf %16, %20 : vector<8x128xf32>
    %c0_13 = arith.constant 0 : index
    %c0_14 = arith.constant 0 : index
    %22 = vector.load %arg7[%c0_13, %c0_14] : memref<8x128xf32, #tpu.memory_space<vmem>>, vector<8x128xf32>
    tpu.vector_store %arg7[%c0_13, %c0_14], %21 {strides = array<i32>} : memref<8x128xf32, #tpu.memory_space<vmem>>, vector<8x128xf32>,
    %c0_i32_15 = arith.constant 0 : i32
    %23 = arith.cmpi eq, %arg1, %c0_i32_15 : i32
    %24 = arith.extui %23 : i1 to i32
    %c0_i32_16 = arith.constant 0 : i32
    %25 = arith.cmpi ne, %24, %c0_i32_16 : i32
    scf.if %25 {
      %c0_17 = arith.constant 0 : index
      %c0_18 = arith.constant 0 : index
      %26 = vector.load %arg6[%c0_17, %c0_18] : memref<8x128xf32, #tpu.memory_space<vmem>>, vector<8x128xf32>
      %27 = vector.shape_cast %26 : vector<8x128xf32> to vector<1x8x128xf32>
      %c0_19 = arith.constant 0 : index
      %c0_20 = arith.constant 0 : index
      %c0_21 = arith.constant 0 : index
      %28 = vector.load %arg4[%c0_19, %c0_20, %c0_21] : memref<1x8x128xf32, #tpu.memory_space<vmem>>, vector<1x8x128xf32>
      tpu.vector_store %arg4[%c0_19, %c0_20, %c0_21], %27 {strides = array<i32>} : memref<1x8x128xf32, #tpu.memory_space<vmem>>, vector<1x8x128xf32>,
      %c0_22 = arith.constant 0 : index
      %c0_23 = arith.constant 0 : index
      %29 = vector.load %arg7[%c0_22, %c0_23] : memref<8x128xf32, #tpu.memory_space<vmem>>, vector<8x128xf32>
      %30 = vector.shape_cast %29 : vector<8x128xf32> to vector<1x8x128xf32>
      %c0_24 = arith.constant 0 : index
      %c0_25 = arith.constant 0 : index
      %c0_26 = arith.constant 0 : index
      %31 = vector.load %arg5[%c0_24, %c0_25, %c0_26] : memref<1x8x128xf32, #tpu.memory_space<vmem>>, vector<1x8x128xf32>
      tpu.vector_store %arg5[%c0_24, %c0_25, %c0_26], %30 {strides = array<i32>} : memref<1x8x128xf32, #tpu.memory_space<vmem>>, vector<1x8x128xf32>,
    } else {
    }
    return
  }
  func.func @transform_0(%arg0: i32, %arg1: i32) -> (i32, i32) {
    %c1_i32 = arith.constant 1 : i32
    %0 = arith.muli %arg0, %c1_i32 : i32
    %1 = arith.addi %0, %arg1 : i32
    %c0_i32 = arith.constant 0 : i32
    %c0_i32_0 = arith.constant 0 : i32
    return %1, %c0_i32 : i32, i32
  }
  func.func @transform_1(%arg0: i32, %arg1: i32) -> (i32, i32) {
    %c1_i32 = arith.constant 1 : i32
    %0 = arith.muli %arg0, %c1_i32 : i32
    %1 = arith.addi %0, %arg1 : i32
    %c0_i32 = arith.constant 0 : i32
    %c0_i32_0 = arith.constant 0 : i32
    return %1, %c0_i32 : i32, i32
  }
  func.func @transform_2(%arg0: i32, %arg1: i32) -> (i32, i32, i32) {
    %c0_i32 = arith.constant 0 : i32
    %c0_i32_0 = arith.constant 0 : i32
    %c0_i32_1 = arith.constant 0 : i32
    return %arg0, %c0_i32, %c0_i32_0 : i32, i32, i32
  }
  func.func @transform_3(%arg0: i32, %arg1: i32) -> (i32, i32, i32) {
    %c0_i32 = arith.constant 0 : i32
    %c0_i32_0 = arith.constant 0 : i32
    %c0_i32_1 = arith.constant 0 : i32
    return %arg0, %c0_i32, %c0_i32_0 : i32, i32, i32
  }
}

</mosaic_0001>

<bundles_post_ra>
// kernel: tpu_custom_call.1
= control target key start
LH: loop header
LB: loop body
LE: loop exit
PB: predicated region body
PF: predicated region fallthrough
CT: control target
= control target key end

     0   :  { %9 = vsyncpa [#allocation5], 0  ;;  %s286_s0 = inlined_call_operand.hbm [shape: f32[16,128], index: 0, kind: input, shape index: {}]   ;;  %s287_s1 = inlined_call_operand.hbm [shape: f32[16,128], index: 1, kind: input, shape index: {}]   ;;  %s288_s2 = inlined_call_operand.hbm [shape: f32[1,8,128], index: 2, kind: output, shape index: {0}]   ;;  %s289_s3 = inlined_call_operand.hbm [shape: f32[1,8,128], index: 3, kind: output, shape index: {1}]  }
   0x1   :  { %10 = vsyncpa [#allocation8], 0 }
   0x2   :  { %11 = vsyncpa [#allocation6], 0 }
   0x3   :  { %12 = vsyncpa [#allocation11], 0  ;;  %s21_s14 = sshll.u32 %s286_s0, 4  ;;  %s246_s15 = smov [#allocation4]   ;;  %s22_s14 = int_to_ptr.hbm [resolvable:$true] %s21_s14 }
   0x4   :  { %s23_s16 = sshll.u32 %s246_s15, 4  ;;  %s38_s19 = sshll.u32 %s287_s1, 4  ;;  %s24_s16 = int_to_ptr.vmem [resolvable:$true] %s23_s16  ;;  %s39_s19 = int_to_ptr.hbm [resolvable:$true] %s38_s19 }
   0x5   :  { %s247_s20 = smov 128   ;;  %s248_s21 = smov 8  }
   0x6   :  { %29 = dma.hbm_to_vmem [thread:$0]  %s22_s14, 256, %s24_s16, [#allocation5], %s247_s20, %s247_s20, %s248_s21  }
   0x7   :  { %s249_s22 = smov [#allocation7]  }
   0x8   :  { %s40_s23 = sshll.u32 %s249_s22, 4  ;;  %s41_s23 = int_to_ptr.vmem [resolvable:$true] %s40_s23 }
   0x9   :  { %46 = dma.hbm_to_vmem [thread:$0]  %s39_s19, 256, %s41_s23, [#allocation8], %s247_s20, %s247_s20, %s248_s21  }
   0xa   :  { %238 = dma.done.wait [#allocation5], 256  }
   0xb   :  { %239 = vsyncadd [#allocation5], 4294967040 }
   0xc   :  { %240 = dma.done.wait [#allocation8], 256  }
   0xd   :  { %241 = vsyncadd [#allocation8], 4294967040  ;;  %v65_v0 = vld [vmem:[#allocation4] sm:$0xff]  ;;  %v66_v1 = vld [vmem:[#allocation4 + $0x8] sm:$0xff]  ;;  %vm250_vm2 = vmmov 1   ;;  %s251_s0 = smov [#allocation10]  }
   0xe   :  { %v67_v2 = vld [vmem:[#allocation7] sm:$0xff]  ;;  %v68_v3 = vld [vmem:[#allocation7 + $0x8] sm:$0xff]  ;;  %s114_s1 = sshll.u32 %s251_s0, 4  ;;  %s116_s26 = sshll.u32 %s289_s3, 4  ;;  %v252_v7 = vmov 0.0   ;;  %s115_s1 = int_to_ptr.vmem [resolvable:$true] %s114_s1  ;;  %s117_s26 = int_to_ptr.hbm [resolvable:$true] %s116_s26 }
   0xf   :  { %vm69_vm0 = vcmp.ne.f32.partialorder %v67_v2, %v67_v2  ;;  %v73_v4 = vsub.f32 %v65_v0, %v67_v2  ;;  %vm70_vm1 = vcmp.ne.f32.partialorder %v68_v3, %v68_v3  ;;  %v74_v5 = vsub.f32 %v66_v1, %v68_v3  ;;  %s253_s27 = smov [#allocation9]   ;;  %s105_s4 = sshll.u32 %s288_s2, 4  ;;  %s106_s4 = int_to_ptr.hbm [resolvable:$true] %s105_s4 }
  0x10   :  { %vm71_vm3 = vmxor %vm69_vm0, %vm250_vm2  ;;  %s103_s28 = sshll.u32 %s253_s27, 4  ;;  %s104_s28 = int_to_ptr.vmem [resolvable:$true] %s103_s28 }
  0x11   :  { %vm72_vm4 = vmxor %vm70_vm1, %vm250_vm2  ;;  %v75_v6 = vsel %vm71_vm3, %v73_v4, 0.0  ;;  %v132_v8 = vsel %vm71_vm3, 1.0, %v252_v7 }
  0x12   :  { %v76_v9 = vsel %vm72_vm4, %v74_v5, 0.0  ;;  %v77_v10 = vmul.f32 %v75_v6, %v75_v6  ;;  %v133_v11 = vsel %vm72_vm4, 1.0, %v252_v7 }
  0x13   :  { %v78_v12 = vmul.f32 %v76_v9, %v76_v9  ;;  %v88_v13 = vadd.f32 %v133_v11, %v132_v8 }
  0x15   :  { %v80_v14 = vadd.f32 %v78_v12, %v77_v10  ;;  %97 = vst [vmem:[#allocation10] sm:$0xff] %v88_v13 }
  0x16   :  { %119 = dma.vmem_to_hbm [thread:$0]  %s115_s1, 128, %s117_s26, [#allocation11]  }
  0x17   :  { %95 = vst [vmem:[#allocation9] sm:$0xff] %v80_v14 }
  0x18   :  { %108 = dma.vmem_to_hbm [thread:$0]  %s104_s28, 128, %s106_s4, [#allocation6]  }
  0x19   :  { %242 = dma.done.wait [#allocation6], 128  }
  0x1a   :  { %243 = vsyncadd [#allocation6], 4294967168 }
  0x1b   :  { %244 = dma.done.wait [#allocation11], 128  }
  0x1c   :  { %245 = vsyncadd [#allocation11], 4294967168 }
  0x1d   :  { %128 = vsyncpa [#allocation5], 1 }
  0x1e   :  { %129 = vsyncpa [#allocation8], 1 }
  0x1f   :  { %130 = vsyncpa [#allocation6], 1 }
  0x20   :  { %131 = vsyncpa [#allocation11], 1 }

</bundles_post_ra>
